<compile_context>
chip_gen: v6e
topology: v6e:2x2x1
jax: 0.10.0
libtpu: 0.0.40
codegen_flags: <defaults>
</compile_context>

<pallas_src>
import functools

import jax
import jax.numpy as jnp
from jax.experimental import pallas as pl
from jax.experimental.pallas import tpu as pltpu


# ----------------------------- helpers -----------------------------

def _round_up(x, m):
    return (x + m - 1) // m * m


def _default_block_m():
    """512 is safe for v7x's 64 MiB VMEM; 128-MiB parts (v5e/v6e) take 1024 so
    bigger M tiles amortize the ~0.35us per-grid-step overhead."""
    try:
        info = pltpu.get_tpu_info()
        if getattr(info, "vmem_capacity_bytes", 0) >= (100 << 20):
            return 1024
    except Exception:
        pass
    return 512


def _choose_block_m(M, block_m):
    """M tile: multiple of 16 sublanes (bf16 row packing), as large as possible
    up to block_m; nudge the grid-step count to be even so both v7x TensorCores
    get an equal share of the 'parallel' M axis."""
    bm = min(block_m, _round_up(M, 16))
    steps = pl.cdiv(M, bm)
    if steps > 1 and steps % 2 == 1:
        bm = _round_up(pl.cdiv(M, steps + 1), 16)
    return bm


def _vmem_limit_bytes(bm, K, n_pad, a_itemsize, w_itemsize, out_itemsize):
    """Scoped-VMEM budget from the actual (double-buffered) working set plus a
    margin for Mosaic-internal scratch; clamped below v7x's 64 MiB physical."""
    a_blk = bm * K * a_itemsize
    w_blk = K * n_pad * w_itemsize
    b_blk = n_pad * 4
    o_blk = bm * n_pad * out_itemsize
    working = 2 * (a_blk + o_blk + w_blk + b_blk)
    limit = working + working // 4 + (4 << 20)
    return int(min(max(limit, 16 << 20), 56 << 20))


# ----------------------------- Pallas kernel -----------------------------

def _matmul_bias_kernel(a_ref, w_ref, b_ref, o_ref):
    acc = jnp.dot(a_ref[...], w_ref[...], preferred_element_type=jnp.float32)
    o_ref[...] = (acc + b_ref[...]).astype(o_ref.dtype)


def linear_bias(a, w, b, *, block_m=None, compute_dtype=jnp.bfloat16,
                out_dtype=None):
    """y = a @ w + b in one Pallas GEMM.

    a: (M, K), w: (K, N), b: (N,).  K (= C*patch*patch) and N (= embed_dim)
    stay fully resident in VMEM (constant weight/bias block index -> a single
    DMA for the whole M sweep); only M is tiled, with 16-sublane-aligned,
    lane-dense blocks on a pl.cdiv grid (the partial last block is masked, so
    there is no HBM pad of `a` and no output row slice).
    """
    M, K = a.shape
    N = w.shape[1]
    if out_dtype is None:
        out_dtype = a.dtype
    if block_m is None:
        block_m = _default_block_m()
    if compute_dtype is not None:
        a = a.astype(compute_dtype)
        w = w.astype(compute_dtype)
    bias = b.astype(jnp.float32).reshape(1, N)

    # Pad N (weight/bias only -- tiny) to a multiple of 128 lanes -> unmasked,
    # lane-dense output stores.  embed_dim is usually already a multiple of 128
    # so the trailing slice below is usually dead code.
    n_pad = _round_up(N, 128)
    if n_pad != N:
        w = jnp.pad(w, ((0, 0), (0, n_pad - N)))
        bias = jnp.pad(bias, ((0, 0), (0, n_pad - N)))

    bm = _choose_block_m(M, block_m)
    grid = (pl.cdiv(M, bm),)

    # TODO(synk): if K * n_pad ever outgrows VMEM (not the case for PatchEmbed
    # shapes), tile N with the N axis outermost so the weight is still fetched
    # once per N tile rather than once per M tile.
    # (A pl.Buffered(1) pipeline_mode on w/bias would drop their second VMEM
    # buffer; skipped since the working set is already far below 64 MiB.)
    out = pl.pallas_call(
        _matmul_bias_kernel,
        out_shape=jax.ShapeDtypeStruct((M, n_pad), out_dtype),
        grid=grid,
        in_specs=[
            pl.BlockSpec((bm, K), lambda i: (i, 0)),
            pl.BlockSpec((K, n_pad), lambda i: (0, 0)),   # constant -> one DMA
            pl.BlockSpec((1, n_pad), lambda i: (0, 0)),   # constant -> one DMA
        ],
        out_specs=pl.BlockSpec((bm, n_pad), lambda i: (i, 0)),
        compiler_params=pltpu.CompilerParams(
            dimension_semantics=("parallel",),
            vmem_limit_bytes=_vmem_limit_bytes(
                bm, K, n_pad, a.dtype.itemsize, w.dtype.itemsize,
                jnp.dtype(out_dtype).itemsize),
        ),
    )(a, w, bias)
    if n_pad != N:
        out = out[:, :N]
    return out


# ----------------------------- PatchEmbed forward -----------------------------

def patch_embed_forward(x, params, *, patch, compute_dtype=jnp.bfloat16):
    """PatchEmbed.forward.  x: (B, C, T, H, W).  Returns (tokens, T, W_out)."""
    B, C, T, H, W = x.shape
    E = params["proj_b"].shape[0]
    nH, nW = H // patch, W // patch

    # 'b c t h w -> ((b t) (i j)) (c ph pw)' in a single XLA transpose; the
    # bf16 cast fuses into the same copy so the materialized intermediate is
    # half-size.  See TODO(synk) at the top of the file re full fusion.
    patches = x.reshape(B, C, T, nH, patch, nW, patch)
    patches = patches.transpose(0, 2, 3, 5, 1, 4, 6)          # (b,t,i,j,c,ph,pw)
    patches = patches.reshape(B * T * nH * nW, C * patch * patch)
    if compute_dtype is not None:
        patches = patches.astype(compute_dtype)

    tokens = linear_bias(patches, params["proj_w"], params["proj_b"],
                         compute_dtype=compute_dtype, out_dtype=x.dtype)
    tokens = tokens.reshape(B * T, nH * nW, E)
    return tokens, T, nW


# ----------------------------- parameter init -----------------------------

def init_params(key, *, in_chans, patch, embed_dim):
    """Conv2d-equivalent weights, stored pre-flattened as (K, E) for the GEMM."""
    kw, kb = jax.random.split(key)
    fan_in = in_chans * patch * patch
    s = 1.0 / (fan_in ** 0.5)                      # torch Conv2d default init
    w_conv = jax.random.uniform(kw, (embed_dim, in_chans, patch, patch),
                                jnp.float32, minval=-s, maxval=s)
    bias = jax.random.uniform(kb, (embed_dim,), jnp.float32, minval=-s, maxval=s)
    return {
        "proj_w": w_conv.reshape(embed_dim, fan_in).T,   # (K, E), K = (c, ph, pw)
        "proj_b": bias,
    }


# ----------------------------- main -----------------------------

if __name__ == "__main__":
    key = jax.random.PRNGKey(0)
    kp, kx, ka, kw2, kb2 = jax.random.split(key, 5)

    cfg = dict(in_chans=3, patch=8, img_size=32, embed_dim=128)
    B, T = 2, 2

    params = init_params(kp, in_chans=cfg["in_chans"], patch=cfg["patch"],
                         embed_dim=cfg["embed_dim"])
    x = jax.random.normal(
        kx, (B, cfg["in_chans"], T, cfg["img_size"], cfg["img_size"]),
        dtype=jnp.float32)

    fwd = jax.jit(functools.partial(patch_embed_forward, patch=cfg["patch"]))
    tokens, t_out, w_out = fwd(x, params)
    jax.block_until_ready(tokens)

    # ---- reference: XLA conv (same math as PyTorch Conv2d), f32 / HIGHEST ----
    w_conv = params["proj_w"].T.reshape(cfg["embed_dim"], cfg["in_chans"],
                                        cfg["patch"], cfg["patch"])
    xf = x.transpose(0, 2, 1, 3, 4).reshape(B * T, cfg["in_chans"],
                                            cfg["img_size"], cfg["img_size"])
    ref = jax.lax.conv_general_dilated(
        xf, w_conv, window_strides=(cfg["patch"], cfg["patch"]), padding="VALID",
        dimension_numbers=("NCHW", "OIHW", "NCHW"),
        precision=jax.lax.Precision.HIGHEST)
    ref = ref.reshape(B * T, cfg["embed_dim"], -1).transpose(0, 2, 1)
    ref = ref + params["proj_b"]

    nH = nW = cfg["img_size"] // cfg["patch"]
    assert tokens.shape == (B * T, nH * nW, cfg["embed_dim"]), tokens.shape
    assert tokens.dtype == x.dtype, tokens.dtype
    assert int(t_out) == T and int(w_out) == nW
    assert bool(jnp.all(jnp.isfinite(tokens)))
    # bf16 operands with f32 accumulation -> small rounding error vs f32 ref.
    assert bool(jnp.allclose(tokens, ref, atol=3e-2, rtol=3e-2)), \
        float(jnp.max(jnp.abs(tokens - ref)))

    # ---- exercise the masked partial-last-M-block path (M % block_m != 0) ----
    Mt, Kt, Nt = 72, 192, 128
    at = jax.random.normal(ka, (Mt, Kt), jnp.float32)
    wt = jax.random.normal(kw2, (Kt, Nt), jnp.float32) * 0.05
    bt = jax.random.normal(kb2, (Nt,), jnp.float32)
    yt = linear_bias(at, wt, bt, block_m=32)
    jax.block_until_ready(yt)
    yt_ref = jnp.dot(at, wt, precision=jax.lax.Precision.HIGHEST) + bt
    assert yt.shape == (Mt, Nt), yt.shape
    assert bool(jnp.allclose(yt, yt_ref, atol=3e-2, rtol=3e-2)), \
        float(jnp.max(jnp.abs(yt - yt_ref)))

    print("KERNEL_OK")
</pallas_src>

<mosaic_0001>
module attributes {stable_mosaic.version = 11 : i64} {
  func.func @_matmul_bias_kernel(%arg0: i32, %arg1: memref<64x192xbf16, #tpu.memory_space<vmem>>, %arg2: memref<192x128xbf16, #tpu.memory_space<vmem>>, %arg3: memref<1x128xf32, #tpu.memory_space<vmem>>, %arg4: memref<64x128xf32, #tpu.memory_space<vmem>>) attributes {dimension_semantics = [#tpu.dimension_semantics<parallel>], iteration_bounds = array<i64: 1>, scalar_prefetch = 0 : i64, scratch_operands = 0 : i64, tpu.core_type = #tpu.core_type<tc>, window_params = [{transform_indices = @transform_0, window_bounds = array<i64: 64, 192>}, {pipeline_mode = #tpu.pipeline_mode<synchronous>, transform_indices = @transform_1, window_bounds = array<i64: 192, 128>}, {pipeline_mode = #tpu.pipeline_mode<synchronous>, transform_indices = @transform_2, window_bounds = array<i64: 1, 128>}, {transform_indices = @transform_3, window_bounds = array<i64: 64, 128>}]} {
    %c0 = arith.constant 0 : index
    %c0_0 = arith.constant 0 : index
    %0 = vector.load %arg1[%c0, %c0_0] : memref<64x192xbf16, #tpu.memory_space<vmem>>, vector<64x192xbf16>
    %c0_1 = arith.constant 0 : index
    %c0_2 = arith.constant 0 : index
    %1 = vector.load %arg2[%c0_1, %c0_2] : memref<192x128xbf16, #tpu.memory_space<vmem>>, vector<192x128xbf16>
    %cst = arith.constant dense<0.000000e+00> : vector<64x128xf32>
    %2 = tpu.matmul %0, %1, %cst {dimension_numbers = #tpu.dot_dimension_numbers<[1], [0], [0], [1], [0, 0, 1, 1], [], []>} : vector<64x192xbf16>, vector<192x128xbf16>, vector<64x128xf32> -> vector<64x128xf32>
    %c0_3 = arith.constant 0 : index
    %c0_4 = arith.constant 0 : index
    %3 = vector.load %arg3[%c0_3, %c0_4] : memref<1x128xf32, #tpu.memory_space<vmem>>, vector<1x128xf32>
    %4 = vector.broadcast %3 : vector<1x128xf32> to vector<64x128xf32>
    %5 = arith.addf %2, %4 : vector<64x128xf32>
    %c0_5 = arith.constant 0 : index
    %c0_6 = arith.constant 0 : index
    %6 = vector.load %arg4[%c0_5, %c0_6] : memref<64x128xf32, #tpu.memory_space<vmem>>, vector<64x128xf32>
    tpu.vector_store %arg4[%c0_5, %c0_6], %5 {strides = array<i32>} : memref<64x128xf32, #tpu.memory_space<vmem>>, vector<64x128xf32>,
    return
  }
  func.func @transform_0(%arg0: i32) -> (i32, i32) {
    %c0_i32 = arith.constant 0 : i32
    %c0_i32_0 = arith.constant 0 : i32
    return %arg0, %c0_i32 : i32, i32
  }
  func.func @transform_1(%arg0: i32) -> (i32, i32) {
    %c0_i32 = arith.constant 0 : i32
    %c0_i32_0 = arith.constant 0 : i32
    %c0_i32_1 = arith.constant 0 : i32
    return %c0_i32, %c0_i32_0 : i32, i32
  }
  func.func @transform_2(%arg0: i32) -> (i32, i32) {
    %c0_i32 = arith.constant 0 : i32
    %c0_i32_0 = arith.constant 0 : i32
    %c0_i32_1 = arith.constant 0 : i32
    return %c0_i32, %c0_i32_0 : i32, i32
  }
  func.func @transform_3(%arg0: i32) -> (i32, i32) {
    %c0_i32 = arith.constant 0 : i32
    %c0_i32_0 = arith.constant 0 : i32
    return %arg0, %c0_i32 : i32, i32
  }
}

</mosaic_0001>

<bundles_post_ra>
// kernel: patch_embed_forward.1
= control target key start
LH: loop header
LB: loop body
LE: loop exit
PB: predicated region body
PF: predicated region fallthrough
CT: control target
= control target key end

     0   :  { %v364_v1 = vmov 0   ;;  %vm163_vm0 = vcmask 523264   ;;  %s458_s0 = inlined_call_operand.vmem [shape: bf16[64,192], index: 0, kind: input, shape index: {}]   ;;  %s459_s1 = inlined_call_operand.vmem [shape: bf16[192,128], index: 1, kind: input, shape index: {}]   ;;  %s460_s2 = inlined_call_operand.vmem [shape: f32[1,128], index: 2, kind: input, shape index: {}]   ;;  %s461_s3 = inlined_call_operand.hbm [shape: f32[64,128], index: 3, kind: output, shape index: {}]  }
   0x1   :  { %v318_v0 = vld [vmem:[%s459_s1 + $0x38] sm:$0xff]   ;;  %176 = vmatprep.subr.bf16.mxu0 %v364_v1  ;;  %290 = vmatprep.subr.bf16.mxu1 %v364_v1  ;;  %v319_v2 = vld [vmem:[%s459_s1 + $0x30] sm:$0xff]   ;;  %v320_v3 = vld [vmem:[%s459_s1 + $0x28] sm:$0xff]  }
   0x2   :  { %177 = vmatpush1.bf16.msra.mxu0 %v318_v0  ;;  %302 = vmatpush1.bf16.msra.mxu1 %v318_v0  ;;  %v321_v4 = vld [vmem:[%s459_s1 + $0x20] sm:$0xff]   ;;  %v322_v6 = vld [vmem:[%s459_s1 + $0x18] sm:$0xff]  }
   0x3   :  { %178 = vmatprep.subr.bf16.mxu0 %v364_v1  ;;  %291 = vmatprep.subr.bf16.mxu1 %v364_v1  ;;  %v332_v5 = vld [vmem:[%s458_s0 + $0x4] ss:$8 sps:$4 sm:$0xff]  }
   0x4   :  { %v335_v7 = vld [vmem:[%s458_s0 + $0x24] ss:$8 sps:$4 sm:$0xff]   ;;  %286 = vmatprep.mubr.msk.bf16.mxu0 %vm163_vm0, %v332_v5 }
   0x5   :  { %288 = vmatprep.mubr.msk.bf16.mxu1 %vm163_vm0, %v335_v7 }
   0x6   :  { %179 = vmatpush1.bf16.msra.mxu0 %v319_v2  ;;  %303 = vmatpush1.bf16.msra.mxu1 %v319_v2 }
   0x7   :  { %180 = vmatprep.subr.bf16.mxu0 %v364_v1  ;;  %292 = vmatprep.subr.bf16.mxu1 %v364_v1 }
   0xa   :  { %181 = vmatpush1.bf16.msra.mxu0 %v320_v3  ;;  %304 = vmatpush1.bf16.msra.mxu1 %v320_v3 }
   0xb   :  { %182 = vmatprep.subr.bf16.mxu0 %v364_v1  ;;  %293 = vmatprep.subr.bf16.mxu1 %v364_v1 }
   0xe   :  { %183 = vmatpush1.bf16.msra.mxu0 %v321_v4  ;;  %305 = vmatpush1.bf16.msra.mxu1 %v321_v4 }
   0xf   :  { %184 = vmatprep.subr.bf16.mxu0 %v364_v1  ;;  %294 = vmatprep.subr.bf16.mxu1 %v364_v1 }
  0x10   :  { %8 = vsyncpa [#allocation3], 0  ;;  %v323_v8 = vld [vmem:[%s459_s1 + $0x10] sm:$0xff]   ;;  %v324_v9 = vld [vmem:[%s459_s1 + $0x8] sm:$0xff]  }
  0x11   :  { %v325_v10 = vld [vmem:[%s459_s1] sm:$0xff]   ;;  %v326_v11 = vld [vmem:[%s459_s1 + $0x58] sm:$0xff]   ;;  %v327_v12 = vld [vmem:[%s459_s1 + $0x50] sm:$0xff]  }
  0x12   :  { %185 = vmatpush1.bf16.msra.mxu0 %v322_v6  ;;  %306 = vmatpush1.bf16.msra.mxu1 %v322_v6  ;;  %v328_v13 = vld [vmem:[%s459_s1 + $0x48] sm:$0xff]   ;;  %v329_v14 = vld [vmem:[%s459_s1 + $0x40] sm:$0xff]   ;;  %v336_v17 = vld [vmem:[%s458_s0 + $0x14] ss:$8 sps:$4 sm:$0xff]  }
  0x13   :  { %186 = vmatprep.subr.bf16.mxu0 %v364_v1  ;;  %295 = vmatprep.subr.bf16.mxu1 %v364_v1  ;;  %v330_v15 = vld [vmem:[%s458_s0] ss:$8 sps:$4 sm:$0xff]   ;;  %v338_v18 = vld [vmem:[%s458_s0 + $0x34] ss:$8 sps:$4 sm:$0xff]   ;;  %v340_v19 = vld [vmem:[%s458_s0 + $0x10] ss:$8 sps:$4 sm:$0xff]  }
  0x14   :  { %v333_v16 = vld [vmem:[%s458_s0 + $0x20] ss:$8 sps:$4 sm:$0xff]   ;;  %v341_v20 = vld [vmem:[%s458_s0 + $0x30] ss:$8 sps:$4 sm:$0xff]   ;;  %s365_s0 = smov [#allocation2]  }
  0x15   :  { %v265_v21 = vld [vmem:[%s460_s2] ss:$0 sm:$0xff]  ;;  %s254_s2 = sshll.u32 %s365_s0, 4  ;;  %s255_s2 = int_to_ptr.vmem [resolvable:$true] %s254_s2 }
  0x16   :  { %187 = vmatpush1.bf16.msra.mxu0 %v323_v8  ;;  %307 = vmatpush1.bf16.msra.mxu1 %v323_v8  ;;  %s342_s26 = scalar_lea.vmem %s255_s2, 1024  ;;  %p347_p1 = scmp.lt.s32.totalorder %s255_s2, %s255_s2 }
  0x17   :  { %188 = vmatprep.subr.bf16.mxu0 %v364_v1  ;;  %296 = vmatprep.subr.bf16.mxu1 %v364_v1  ;;  %p343_p0 = scmp.ne.s32.totalorder %s255_s2, %s342_s26  ;;  %p348_p2 = scmp.lt.s32.totalorder %s342_s26, %s342_s26 }
  0x19   :  { %p349_p3 = por %p348_p2, %p347_p1 }
  0x1a   :  { %189 = vmatpush1.bf16.msra.mxu0 %v324_v9  ;;  %308 = vmatpush1.bf16.msra.mxu1 %v324_v9 }
  0x1b   :  { %190 = vmatprep.subr.bf16.mxu0 %v364_v1  ;;  %297 = vmatprep.subr.bf16.mxu1 %v364_v1  ;;  %p350_p4 = pnand %p349_p3, %p343_p0 }
  0x1e   :  { %191 = vmatpush1.bf16.msra.mxu0 %v325_v10  ;;  %309 = vmatpush1.bf16.msra.mxu1 %v325_v10 }
  0x1f   :  { %200 = vmatprep.subr.bf16.mxu0 %v364_v1  ;;  %298 = vmatprep.subr.bf16.mxu1 %v364_v1 }
  0x22   :  { %201 = vmatpush2.bf16.msra.mxu0 %v326_v11  ;;  %310 = vmatpush2.bf16.msra.mxu1 %v326_v11 }
  0x23   :  { %202 = vmatprep.subr.bf16.mxu0 %v364_v1  ;;  %299 = vmatprep.subr.bf16.mxu1 %v364_v1 }
  0x26   :  { %203 = vmatpush2.bf16.msra.mxu0 %v327_v12  ;;  %311 = vmatpush2.bf16.msra.mxu1 %v327_v12 }
  0x27   :  { %204 = vmatprep.subr.bf16.mxu0 %v364_v1  ;;  %300 = vmatprep.subr.bf16.mxu1 %v364_v1 }
  0x2a   :  { %205 = vmatpush2.bf16.msra.mxu0 %v328_v13  ;;  %312 = vmatpush2.bf16.msra.mxu1 %v328_v13 }
  0x2b   :  { %206 = vmatprep.subr.bf16.mxu0 %v364_v1  ;;  %301 = vmatprep.subr.bf16.mxu1 %v364_v1 }
  0x2e   :  { %207 = vmatpush2.bf16.msra.mxu0 %v329_v14  ;;  %313 = vmatpush2.bf16.msra.mxu1 %v329_v14 }
  0x31   :  { %209 = vmatmul.mubr.bf16.vlgmr.msra.gmra.mxu0 %v330_v15  ;;  %225 = vmatmul.mubr.bf16.vlgmr.msra.gmra.mxu1 %v333_v16 }
  0x32   :  { %287 = vmatprep.mubr.msk.bf16.mxu0 %vm163_vm0, %v336_v17  ;;  %289 = vmatprep.mubr.msk.bf16.mxu1 %vm163_vm0, %v338_v18 }
  0x39   :  { %217 = vmatmul.mubr.bf16.gmra.mxu0 %v340_v19  ;;  %233 = vmatmul.mubr.bf16.gmra.mxu1 %v341_v20 }
  0xf1   :  { %v210_v22 = vpop.f32.mrf.mxu0  ;;  %v226_v23 = vpop.f32.mrf.mxu1 }
  0xf2   :  { %v211_v24 = vadd.f32 %v265_v21, %v210_v22  ;;  %v227_v25 = vadd.f32 %v265_v21, %v226_v23 }
  0xf3   :  { %v212_v26 = vpop.f32.mrf.mxu0  ;;  %v228_v27 = vpop.f32.mrf.mxu1 }
  0xf4   :  { %241 = vst [vmem:[#allocation2] sm:$0xff] %v211_v24  ;;  %245 = vst [vmem:[#allocation2 + $0x20] sm:$0xff] %v227_v25 }
  0xf5   :  { %v213_v28 = vpop.f32.mrf.mxu0  ;;  %v229_v29 = vpop.f32.mrf.mxu1 }
  0xf6   :  { %v214_v30 = vadd.f32 %v265_v21, %v213_v28  ;;  %v230_v31 = vadd.f32 %v265_v21, %v229_v29 }
  0xf7   :  { %v215_v32 = vpop.f32.mrf.mxu0  ;;  %v231_v33 = vpop.f32.mrf.mxu1 }
  0xf8   :  { %242 = vst [vmem:[#allocation2 + $0x8] sm:$0xff] %v214_v30  ;;  %246 = vst [vmem:[#allocation2 + $0x28] sm:$0xff] %v230_v31 }
  0xf9   :  { %v218_v34 = vpop.f32.mrf.mxu0  ;;  %v234_v35 = vpop.f32.mrf.mxu1 }
  0xfa   :  { %v219_v36 = vadd.f32 %v265_v21, %v218_v34  ;;  %v235_v37 = vadd.f32 %v265_v21, %v234_v35 }
  0xfb   :  { %v220_v38 = vpop.f32.mrf.mxu0  ;;  %v236_v39 = vpop.f32.mrf.mxu1 }
  0xfc   :  { %243 = vst [vmem:[#allocation2 + $0x10] sm:$0xff] %v219_v36  ;;  %247 = vst [vmem:[#allocation2 + $0x30] sm:$0xff] %v235_v37 }
  0xfd   :  { %v221_v40 = vpop.f32.mrf.mxu0  ;;  %v237_v41 = vpop.f32.mrf.mxu1 }
  0xfe   :  { %v222_v42 = vadd.f32 %v265_v21, %v221_v40  ;;  %v238_v43 = vadd.f32 %v265_v21, %v237_v41 }
  0xff   :  { %v223_v44 = vpop.f32.mrf.mxu0  ;;  %v239_v45 = vpop.f32.mrf.mxu1 }
 0x100   :  { %244 = vst [vmem:[#allocation2 + $0x18] sm:$0xff] %v222_v42  ;;  %248 = vst [vmem:[#allocation2 + $0x38] sm:$0xff] %v238_v43 }
 0x101   :  { %353 = shalt.err (!%p350_p4)
}
 0x102   :  { %s366_s27 = smov 128   ;;  %s367_s28 = smov 8  }
 0x103   :  { %260 = dma.vmem_to_hbm [thread:$0]  %s255_s2, 1024, %s461_s3, [#allocation3], %s366_s27, %s366_s27, %s367_s28  }
 0x104   :  { %362 = dma.done.wait [#allocation3], 1024  }
 0x105   :  { %363 = vsyncadd [#allocation3], 4294966272 }
 0x106   :  { %264 = vsyncpa [#allocation3], 1 }

</bundles_post_ra>
